<compile_context>
chip_gen: v7x
topology: tpu7x:2x2x1
jax: 0.10.0
libtpu: 0.0.40
codegen_flags: <defaults>
</compile_context>

<pallas_src>
import functools

import jax
import jax.numpy as jnp
from jax import lax
from jax.experimental import pallas as pl
from jax.experimental.pallas import tpu as pltpu


def _round_up(x, m):
    return (x + m - 1) // m * m


def _device_kind():
    try:
        return jax.devices()[0].device_kind.lower()
    except Exception:
        return ""


def _minmax_cols_kernel(w_ref, min_ref, max_ref, *, tm, n_rows, num_row_tiles,
                        needs_row_mask, upcast):
    """Per-column min/max of a (n_rows, n_cols) matrix, accumulated over row tiles.

    Grid: (num_col_tiles [parallel], num_row_tiles [arbitrary / reduction]).
      w_ref:             (tm, tn) block of the weight, native dtype.
      min_ref / max_ref: (1, tn) f32 accumulators, resident across the row axis.
    """
    i = pl.program_id(1)   # row-tile (reduction) index

    @pl.when(i == 0)
    def _():
        min_ref[...] = jnp.full_like(min_ref, jnp.inf)
        max_ref[...] = jnp.full_like(max_ref, -jnp.inf)

    w = w_ref[...]
    if upcast:
        # Non-float dtypes / pre-v6 chips: reduce in f32.
        w = w.astype(jnp.float32)

    def _reduce_plain(wv):
        return (jnp.min(wv, axis=0, keepdims=True).astype(jnp.float32),
                jnp.max(wv, axis=0, keepdims=True).astype(jnp.float32))

    if needs_row_mask:
        def _reduce_masked(wv):
            # (tm, 1) mask only; broadcasts across lanes in the selects.
            rows = lax.broadcasted_iota(jnp.int32, (tm, 1), 0) + i * tm
            valid = rows < n_rows
            pos = jnp.array(jnp.inf, dtype=wv.dtype)
            neg = jnp.array(-jnp.inf, dtype=wv.dtype)
            wmin = jnp.where(valid, wv, pos)
            wmax = jnp.where(valid, wv, neg)
            return (jnp.min(wmin, axis=0, keepdims=True).astype(jnp.float32),
                    jnp.max(wmax, axis=0, keepdims=True).astype(jnp.float32))

        # Only the boundary row tile pays for the mask.
        blk_min, blk_max = lax.cond(i == num_row_tiles - 1,
                                    _reduce_masked, _reduce_plain, w)
    else:
        blk_min, blk_max = _reduce_plain(w)

    min_ref[...] = jnp.minimum(min_ref[...], blk_min)
    max_ref[...] = jnp.maximum(max_ref[...], blk_max)


def weight_equalization_observer_forward(w_orig, running_min, running_max,
                                         *, block_rows=None, block_cols=None,
                                         tiny_fallback_elems=128 * 1024):
    """Mirrors _WeightEqualizationObserver.forward (ch_axis=1 min/max observer).

    Returns (w_orig, new_running_min, new_running_max).
    """
    if not (2 <= w_orig.ndim <= 5):
        raise ValueError(
            "InputEqualizationObserver only supports Linear and Conv layers")

    d0 = int(w_orig.shape[0])
    c = int(w_orig.shape[1])
    d2 = 1
    for s in w_orig.shape[2:]:
        d2 *= int(s)
    n_cols = c * d2

    running_min = jnp.asarray(running_min, dtype=jnp.float32)
    running_max = jnp.asarray(running_max, dtype=jnp.float32)
    if running_min.ndim == 1 and running_min.shape[0] != c:
        raise ValueError(f"running_min has {running_min.shape[0]} channels, "
                         f"weight has {c} (ch_axis=1)")
    if running_max.ndim == 1 and running_max.shape[0] != c:
        raise ValueError(f"running_max has {running_max.shape[0]} channels, "
                         f"weight has {c} (ch_axis=1)")

    if w_orig.size <= tiny_fallback_elems:
        # Kernel launch / per-step overhead dominates for small weights.
        w_f = w_orig.reshape(d0, c, d2).astype(jnp.float32)
        cur_min = jnp.min(w_f, axis=(0, 2))
        cur_max = jnp.max(w_f, axis=(0, 2))
        return (w_orig,
                jnp.minimum(running_min, cur_min),
                jnp.maximum(running_max, cur_max))

    # Contiguous (free) reshape: column index = channel * d2 + spatial_offset.
    w2 = w_orig.reshape(d0, n_cols)
    dtype = jnp.dtype(w_orig.dtype)
    itemsize = dtype.itemsize

    kind = _device_kind()
    is_v7 = "v7" in kind
    old_gen = any(f"v{g}" in kind for g in (2, 3, 4, 5))   # no bf16 VALU
    native_reduce_ok = dtype in (jnp.dtype(jnp.float32), jnp.dtype(jnp.bfloat16),
                                 jnp.dtype(jnp.float16))
    upcast = (not native_reduce_ok) or (old_gen and dtype != jnp.dtype(jnp.float32))

    # Lane tile: multiple of 128, capped at 2048 (keeps accumulator/vreg
    # pressure low and column-tile count >= 1).  On v7x guarantee >= 2 column
    # tiles so both TensorCores get a share of the 'parallel' axis.
    if block_cols is not None:
        tn = _round_up(int(block_cols), 128)
    else:
        tn = min(_round_up(n_cols, 128), 2048)
        if is_v7 and tn >= n_cols and n_cols > 128:
            tn = _round_up(-(-n_cols // 2), 128)

    # Sublane tile: dtype-aware packing granule, block bytes sized for the chip
    # generation (amortize per-step overhead on v7x's 3.2 TB/s HBM).
    granule = max(8, 32 // itemsize)
    max_block_bytes = (16 << 20) if is_v7 else (8 << 20)
    tm_cap = max(granule, (max_block_bytes // (tn * itemsize)) // granule * granule)
    if block_rows is not None:
        tm = min(_round_up(int(block_rows), granule), tm_cap)
    else:
        tm = min(_round_up(d0, granule), tm_cap)

    num_j = pl.cdiv(n_cols, tn)
    num_i = pl.cdiv(d0, tm)
    nc_pad = num_j * tn
    needs_row_mask = (d0 % tm) != 0

    # VMEM budget: double-buffered input block + double-buffered (1, tn) f32
    # output blocks + slack.  Fits v5e/v6e scoped limits and v7x's 64 MiB.
    block_bytes = tm * tn * itemsize
    out_block_bytes = 2 * 2 * tn * 4
    vmem_limit = 2 * block_bytes + out_block_bytes + (4 << 20)
    vmem_limit = int(min(max(vmem_limit, 16 << 20), 48 << 20))

    kernel = functools.partial(_minmax_cols_kernel, tm=tm, n_rows=d0,
                               num_row_tiles=num_i,
                               needs_row_mask=needs_row_mask, upcast=upcast)

    min_cols, max_cols = pl.pallas_call(
        kernel,
        out_shape=(jax.ShapeDtypeStruct((1, nc_pad), jnp.float32),
                   jax.ShapeDtypeStruct((1, nc_pad), jnp.float32)),
        grid=(num_j, num_i),
        in_specs=[pl.BlockSpec((tm, tn), lambda j, i: (i, j))],
        out_specs=(pl.BlockSpec((1, tn), lambda j, i: (0, j)),
                   pl.BlockSpec((1, tn), lambda j, i: (0, j))),
        compiler_params=pltpu.CompilerParams(
            dimension_semantics=("parallel", "arbitrary"),
            vmem_limit_bytes=vmem_limit),
    )(w2)

    # Tiny epilogue on O(C * d2) elements: fold trailing spatial dims, drop the
    # padded lanes (>= n_cols), and combine with the running state.
    cur_min = jnp.min(min_cols[0, :n_cols].reshape(c, d2), axis=1)
    cur_max = jnp.max(max_cols[0, :n_cols].reshape(c, d2), axis=1)

    new_min = jnp.minimum(running_min, cur_min)
    new_max = jnp.maximum(running_max, cur_max)
    return w_orig, new_min, new_max


class WeightEqualizationObserver:
    """Stateful wrapper matching the PyTorch module's observable behavior."""

    def __init__(self, num_columns):
        # "empty" running state emulated with +/- inf (first call just records).
        self.min_val = jnp.full((num_columns,), jnp.inf, dtype=jnp.float32)
        self.max_val = jnp.full((num_columns,), -jnp.inf, dtype=jnp.float32)
        self.equalization_scale = jnp.array(1.0, dtype=jnp.float32)
        # TODO(synk): calculate_qparams of the inner PerChannelMinMaxObserver is
        # not part of forward() and is omitted.

    def __call__(self, w_orig, **kwargs):
        out, self.min_val, self.max_val = weight_equalization_observer_forward(
            w_orig, self.min_val, self.max_val, **kwargs)
        return out

    def get_weight_col_minmax(self):
        return self.min_val, self.max_val

    def set_equalization_scale(self, scale):
        self.equalization_scale = scale


def _ref_per_channel_minmax(w):
    """Pure-JAX reference of PerChannelMinMaxObserver(ch_axis=1) on one tensor."""
    ndim = w.ndim
    perm = (1,) + tuple(i for i in range(ndim) if i != 1)
    wf = jnp.transpose(w, perm).reshape(w.shape[1], -1).astype(jnp.float32)
    return wf.min(axis=1), wf.max(axis=1)


if __name__ == "__main__":
    key = jax.random.PRNGKey(0)
    k1, k2, k3, k4 = jax.random.split(key, 4)

    # --- 1) Conv2d-style OIHW weight: out_ch=16, in_ch=8, kH=kW=3 (ch_axis=1 ->
    # 8 channels).  Small weight -> fused-XLA fallback path + running state.
    w_conv1 = jax.random.normal(k1, (16, 8, 3, 3), dtype=jnp.float32)
    w_conv2 = jax.random.normal(k2, (16, 8, 3, 3), dtype=jnp.float32) * 2.0

    obs = WeightEqualizationObserver(num_columns=8)
    out1 = obs(w_conv1)            # first observation (records min/max)
    out2 = obs(w_conv2)            # running update
    jax.block_until_ready(out2)

    min_val, max_val = obs.get_weight_col_minmax()
    jax.block_until_ready((min_val, max_val))

    ref_min = jnp.full((8,), jnp.inf)
    ref_max = jnp.full((8,), -jnp.inf)
    for w in (w_conv1, w_conv2):
        m, x = _ref_per_channel_minmax(w)
        ref_min = jnp.minimum(ref_min, m)
        ref_max = jnp.maximum(ref_max, x)
    assert jnp.allclose(min_val, ref_min), (min_val, ref_min)
    assert jnp.allclose(max_val, ref_max), (max_val, ref_max)
    assert jnp.array_equal(out2, w_conv2)   # forward returns its input unchanged

    # --- 2) Linear bf16 weight (out=64, in=256), forced through the Pallas
    # kernel (tiny_fallback_elems=0) with small tiles to exercise the
    # multi-tile reduction grid and native-dtype (no upcast) reduce.
    w_lin = jax.random.normal(k3, (64, 256), dtype=jnp.float32).astype(jnp.bfloat16)
    run_min = jnp.full((256,), jnp.inf, dtype=jnp.float32)
    run_max = jnp.full((256,), -jnp.inf, dtype=jnp.float32)
    _, lin_min, lin_max = weight_equalization_observer_forward(
        w_lin, run_min, run_max, block_rows=16, block_cols=128,
        tiny_fallback_elems=0)
    jax.block_until_ready((lin_min, lin_max))

    ref_lin_min, ref_lin_max = _ref_per_channel_minmax(w_lin)
    assert jnp.allclose(lin_min, ref_lin_min), (lin_min, ref_lin_min)
    assert jnp.allclose(lin_max, ref_lin_max), (lin_max, ref_lin_max)

    # --- 3) Ragged f32 weight (72 rows, 200 cols): exercises the boundary-row
    # lax.cond mask and the epilogue slice of the padded column lanes.
    w_rag = jax.random.normal(k4, (72, 200), dtype=jnp.float32)
    run_min2 = jnp.full((200,), jnp.inf, dtype=jnp.float32)
    run_max2 = jnp.full((200,), -jnp.inf, dtype=jnp.float32)
    _, rag_min, rag_max = weight_equalization_observer_forward(
        w_rag, run_min2, run_max2, block_rows=32, block_cols=128,
        tiny_fallback_elems=0)
    jax.block_until_ready((rag_min, rag_max))

    ref_rag_min, ref_rag_max = _ref_per_channel_minmax(w_rag)
    assert jnp.allclose(rag_min, ref_rag_min), (rag_min, ref_rag_min)
    assert jnp.allclose(rag_max, ref_rag_max), (rag_max, ref_rag_max)

    print("KERNEL_OK")
</pallas_src>

<mosaic_0001>
module attributes {stable_mosaic.version = 11 : i64} {
  func.func @_minmax_cols_kernel(%arg0: i32, %arg1: i32, %arg2: memref<16x128xbf16, #tpu.memory_space<vmem>>, %arg3: memref<1x128xf32, #tpu.memory_space<vmem>>, %arg4: memref<1x128xf32, #tpu.memory_space<vmem>>) attributes {dimension_semantics = [#tpu.dimension_semantics<parallel>, #tpu.dimension_semantics<arbitrary>], iteration_bounds = array<i64: 2, 4>, scalar_prefetch = 0 : i64, scratch_operands = 0 : i64, tpu.core_type = #tpu.core_type<tc>, window_params = [{transform_indices = @transform_0, window_bounds = array<i64: 16, 128>}, {transform_indices = @transform_1, window_bounds = array<i64: 1, 128>}, {transform_indices = @transform_2, window_bounds = array<i64: 1, 128>}]} {
    %c0_i32 = arith.constant 0 : i32
    %0 = arith.cmpi eq, %arg1, %c0_i32 : i32
    %1 = arith.extui %0 : i1 to i32
    %c0_i32_0 = arith.constant 0 : i32
    %2 = arith.cmpi ne, %1, %c0_i32_0 : i32
    scf.if %2 {
      %cst_11 = arith.constant 0x7F800000 : f32
      %16 = vector.broadcast %cst_11 : f32 to vector<1x128xf32>
      %c0_12 = arith.constant 0 : index
      %c0_13 = arith.constant 0 : index
      %17 = vector.load %arg3[%c0_12, %c0_13] : memref<1x128xf32, #tpu.memory_space<vmem>>, vector<1x128xf32>
      tpu.vector_store %arg3[%c0_12, %c0_13], %16 {strides = array<i32>} : memref<1x128xf32, #tpu.memory_space<vmem>>, vector<1x128xf32>,
      %cst_14 = arith.constant 0xFF800000 : f32
      %18 = vector.broadcast %cst_14 : f32 to vector<1x128xf32>
      %c0_15 = arith.constant 0 : index
      %c0_16 = arith.constant 0 : index
      %19 = vector.load %arg4[%c0_15, %c0_16] : memref<1x128xf32, #tpu.memory_space<vmem>>, vector<1x128xf32>
      tpu.vector_store %arg4[%c0_15, %c0_16], %18 {strides = array<i32>} : memref<1x128xf32, #tpu.memory_space<vmem>>, vector<1x128xf32>,
    } else {
    }
    %c0 = arith.constant 0 : index
    %c0_1 = arith.constant 0 : index
    %3 = vector.load %arg2[%c0, %c0_1] : memref<16x128xbf16, #tpu.memory_space<vmem>>, vector<16x128xbf16>
    %cst = arith.constant dense<0x7F80> : vector<128xbf16>
    %4 = vector.multi_reduction <minimumf>, %3, %cst [0] : vector<16x128xbf16> to vector<128xbf16>
    %5 = vector.shape_cast %4 : vector<128xbf16> to vector<1x128xbf16>
    %6 = arith.extf %5 : vector<1x128xbf16> to vector<1x128xf32>
    %cst_2 = arith.constant dense<0xFF80> : vector<128xbf16>
    %7 = vector.multi_reduction <maximumf>, %3, %cst_2 [0] : vector<16x128xbf16> to vector<128xbf16>
    %8 = vector.shape_cast %7 : vector<128xbf16> to vector<1x128xbf16>
    %9 = arith.extf %8 : vector<1x128xbf16> to vector<1x128xf32>
    %c0_3 = arith.constant 0 : index
    %c0_4 = arith.constant 0 : index
    %10 = vector.load %arg3[%c0_3, %c0_4] : memref<1x128xf32, #tpu.memory_space<vmem>>, vector<1x128xf32>
    %11 = arith.minimumf %10, %6 : vector<1x128xf32>
    %c0_5 = arith.constant 0 : index
    %c0_6 = arith.constant 0 : index
    %12 = vector.load %arg3[%c0_5, %c0_6] : memref<1x128xf32, #tpu.memory_space<vmem>>, vector<1x128xf32>
    tpu.vector_store %arg3[%c0_5, %c0_6], %11 {strides = array<i32>} : memref<1x128xf32, #tpu.memory_space<vmem>>, vector<1x128xf32>,
    %c0_7 = arith.constant 0 : index
    %c0_8 = arith.constant 0 : index
    %13 = vector.load %arg4[%c0_7, %c0_8] : memref<1x128xf32, #tpu.memory_space<vmem>>, vector<1x128xf32>
    %14 = arith.maximumf %13, %9 : vector<1x128xf32>
    %c0_9 = arith.constant 0 : index
    %c0_10 = arith.constant 0 : index
    %15 = vector.load %arg4[%c0_9, %c0_10] : memref<1x128xf32, #tpu.memory_space<vmem>>, vector<1x128xf32>
    tpu.vector_store %arg4[%c0_9, %c0_10], %14 {strides = array<i32>} : memref<1x128xf32, #tpu.memory_space<vmem>>, vector<1x128xf32>,
    return
  }
  func.func @transform_0(%arg0: i32, %arg1: i32) -> (i32, i32) {
    %c0_i32 = arith.constant 0 : i32
    return %arg1, %arg0 : i32, i32
  }
  func.func @transform_1(%arg0: i32, %arg1: i32) -> (i32, i32) {
    %c0_i32 = arith.constant 0 : i32
    %c0_i32_0 = arith.constant 0 : i32
    return %c0_i32, %arg0 : i32, i32
  }
  func.func @transform_2(%arg0: i32, %arg1: i32) -> (i32, i32) {
    %c0_i32 = arith.constant 0 : i32
    %c0_i32_0 = arith.constant 0 : i32
    return %c0_i32, %arg0 : i32, i32
  }
}

</mosaic_0001>

<bundles_post_ra>
// kernel: tpu_custom_call.1
= control target key start
LH: loop header
LB: loop body
LE: loop exit
PB: predicated region body
PF: predicated region fallthrough
CT: control target
= control target key end

     0   :  { %8 = vsyncpa [#allocation3], 0  ;;  %s968_s0 = inlined_call_operand.hbm [shape: bf16[64,256], index: 0, kind: input, shape index: {}]   ;;  %s969_s1 = inlined_call_operand.hbm [shape: f32[1,256], index: 1, kind: output, shape index: {0}]   ;;  %s970_s2 = inlined_call_operand.hbm [shape: f32[1,256], index: 2, kind: output, shape index: {1}]  }
   0x1   :  { %10 = vsyncpa [#allocation3 + $0x1], 0 }
   0x2   :  { %11 = vsyncpa [#allocation4], 0 }
   0x3   :  { %13 = vsyncpa [#allocation4 + $0x1], 0 }
   0x4   :  { %14 = vsyncpa [#allocation7], 0 }
   0x5   :  { %16 = vsyncpa [#allocation7 + $0x1], 0  ;;  %s704_s9 = smov 0   ;;  %s706_s10 = smov 0  }
   0x6   :  { %s708_s11 = smov 0   ;;  %s710_s12 = smov 0  }
   0x7   :  { %s712_s13 = smov 0   ;;  %s714_s14 = smov 0  }
   0x8   :  { %s716_s15 = smov 0   ;;  %s718_s16 = smov 0  }
   0x9   :  { %s720_s17 = smov 0   ;;  %s722_s18 = smov 0  }
   0xa   :  { %s724_s19 = smov 0  }
   0xb LB: > { %s365_s20 = sadd.s32 4294967295, %s679_s19   ;;  %s366_s21 = sadd.s32 4294967294, %s679_s19   ;;  %s679_s19 = sphi %s724_s19, %s22_s19   ;;  %s675_s18 = sphi %s722_s18, %s991_s18   ;;  %s671_s17 = sphi %s720_s17, %s990_s17   ;;  %s667_s16 = sphi %s718_s16, %s989_s16   ;;  %s663_s15 = sphi %s716_s15, %s988_s15   ;;  %s659_s14 = sphi %s714_s14, %s987_s14   ;;  %s655_s13 = sphi %s712_s13, %s986_s13   ;;  %s651_s12 = sphi %s710_s12, %s985_s12   ;;  %s647_s11 = sphi %s708_s11, %s984_s11   ;;  %s643_s10 = sphi %s706_s10, %s983_s10   ;;  %s639_s9 = sphi %s704_s9, %s982_s9  }
   0xc   : > { %s31_s22 = sadd.s32 1, %s671_s17  ;;  %s34_s23 = sadd.s32 1, %s675_s18 }
   0xd   : > { %p32_p0 = scmp.ge.s32.totalorder %s31_s22, 4  ;;  %s43_s24 = sadd.s32 1, %s659_s14 }
   0xe   : > { %p50_p1 = scmp.ne.s32.totalorder %s659_s14, %s655_s13  ;;  %p51_p2 = scmp.eq.s32.totalorder %s679_s19, 0 }
   0xf   : > { %s993_s22 = smov (%p32_p0, %s31_s22), 0  ;;  %s995_s23 = smov (!%p32_p0, %s34_s23), %s675_s18 }
  0x10   : > { %s38_s25 = ssub.s32 %s671_s17, %s993_s22  ;;  %p770_p3 = por %p51_p2, %p50_p1 }
  0x11   : > { %p36_p4 = scmp.ge.s32.totalorder %s995_s23, 2  ;;  %p56_p5 = scmp.ne.s32.totalorder %s655_s13, %s651_s12 }
  0x12   : > { %p57_p6 = scmp.eq.s32.totalorder %s365_s20, 0  ;;  %s69_s27 = sadd.s32 1, %s647_s11 }
  0x13   : > { %s997_s23 = smov (%p36_p4, %s995_s23), 0  ;;  %p79_p8 = scmp.ne.s32.totalorder %s647_s11, %s643_s10 }
  0x14   : > { %974 = sst [smem:[#allocation11_spill]] %s997_s23  ;;  %p778_p7 = por %p57_p6, %p56_p5 }
  0x15   : > { %s39_s29 = ssub.s32 %s675_s18, %s997_s23  ;;  %p80_p9 = scmp.eq.s32.totalorder %s365_s20, 7 }
  0x16   : > { %s40_s30 = sor.u32 %s39_s29, %s38_s25  ;;  %p67_p10 = scmp.eq.s32.totalorder %s39_s29, 0 }
  0x17   : > { %p41_p11 = scmp.eq.s32.totalorder %s40_s30, 0  ;;  %p786_p12 = por %p80_p9, %p79_p8 }
  0x18   : > { %s791_s4 = scalar_select %p67_p10, %s647_s11, %s69_s27  }
  0x19   : > { %s976_s3 = scalar_select %p786_p12, 1, 0 }
  0x1a   : > { %s794_s5 = scalar_select %p41_p11, %s659_s14, %s43_s24  }
  0x1b   : > { %p85_p13 = scmp.ne.s32.totalorder %s643_s10, %s639_s9  ;;  %p86_p0 = scmp.eq.s32.totalorder %s366_s21, 7 }
  0x1c   : > { %p399_p1 = scmp.lt.s32.totalorder %s679_s19, 8  ;;  %s132_s7 = sand.u32 1, %s659_s14  }
  0x1d   : > { %p799_p2 = por %p86_p0, %p85_p13  ;;  %s369_s8 = sshll.u32 %s132_s7, 3 }
  0x1e   : > { %s381_s12 = sshll.u32 %s671_s17, 2  ;;  %s136_s25 = scalar_lea.vmem [#allocation2], %s369_s8 }
  0x1f   : > { %s977_s6 = scalar_select %p799_p2, 1, 0 }
  0x20   : > { %s142_s20 = sadd.s32 %s675_s18, %s381_s12  ;;  %s145_s29 = sshll.u32 %s136_s25, 4  ;;  %s806_s29 = int_to_ptr.vmem [resolvable:$true] %s145_s29 }
  0x21   : > { %s372_s30 = sshll.u32 %s142_s20, 6  ;;  %p815_p4 = pnand %p399_p1, %p770_p3 }
  0x22   : > { %s811_s24 = scalar_lea.hbm %s968_s0, %s372_s30  ;;  %s819_s8 = scalar_lea.sflag [#allocation3], %s132_s7 }
  0x23   : > { %s495_s12 = scalar_lea.hbm %s811_s24, 128  ;;  %p497_p6 = pneg %p815_p4 }
  0x24   : > { %p496_p5 = scmp.ne.s32.totalorder %s811_s24, %s495_s12  ;;  %s500_s20 = scalar_lea.hbm %s968_s0, 1024 }
  0x25   : > { %p501_p3 = scmp.lt.u32.totalorder %s811_s24, %s968_s0  ;;  %p502_p10 = scmp.lt.u32.totalorder %s500_s20, %s495_s12 }
  0x26   : > { %p498_p8 = pnand %p497_p6, %p496_p5  ;;  %p504_p13 = scmp.lt.u32.totalorder %s495_s12, %s811_s24 }
  0x27   : > { %p503_p11 = por %p502_p10, %p501_p3 }
  0x28   : > { %p499_p9 = pneg %p498_p8 }
  0x29   : > { %p505_p0 = por %p504_p13, %p503_p11 }
  0x2b   : > { %p506_p1 = pnand %p505_p0, %p499_p9 }
  0x2d   : > { %509 = shalt.err (!%p506_p1)
}
  0x2e   : > { %s510_s7 = scalar_lea.vmem %s806_s29, 128  ;;  %s681_s27 = smov [#allocation2]  }
  0x2f   : > { %p511_p5 = scmp.ne.s32.totalorder %s806_s29, %s510_s7  ;;  %s515_s23 = sshll.u32 %s681_s27, 4  ;;  %s516_s23 = int_to_ptr.vmem [resolvable:$false] %s515_s23 }
  0x30   : > { %s517_s26 = scalar_lea.vmem %s516_s23, 256  ;;  %p518_p12 = scmp.lt.s32.totalorder %s806_s29, %s516_s23 }
  0x31   : > { %p513_p8 = pnand %p511_p5, %p497_p6  ;;  %p519_p3 = scmp.lt.s32.totalorder %s517_s26, %s510_s7 }
  0x33   : > { %p514_p2 = pneg %p513_p8  ;;  %p520_p10 = por %p519_p3, %p518_p12 }
  0x35   : > { %p521_p11 = pnand %p520_p10, %p514_p2 }
  0x37   : > { %524 = shalt.err (!%p521_p11)
}
  0x38   : > { %s682_s12 = smov 128   ;;  %s683_s20 = smov 64  }
  0x39   : > { %s684_s25 = smov 4   ;;  %p373_p6 = scmp.ge.s32.totalorder %s679_s19, 1 }
  0x3a   : > { %391 = dma.hbm_to_vmem [thread:$0]  (!%p815_p4), %s811_s24, 128, %s806_s29, %s819_s8, %s682_s12, %s683_s20, %s684_s25  }
  0x3b   : > { %p153_p9 = scmp.lt.s32.totalorder %s679_s19, 9 }
  0x3d   : > { %p154_p13 = pnand %p373_p6, %p153_p9 }
  0x3e   : > { %s159_s30 = sand.u32 (!%p154_p13), 1, %s655_s13  }
  0x3f   : > { %157 = sbr.rel (%p154_p13) target bundleno = 140 (0x8c), region = 24  ;;  %s374_s7 = sshll.u32 (!%p154_p13), %s159_s30, 3 }
  0x40   : > { %s160_s27 = scalar_lea.sflag (!%p154_p13), [#allocation3], %s159_s30  ;;  %s163_s23 = scalar_lea.vmem (!%p154_p13), [#allocation2], %s374_s7 }
  0x46   : > { %626 = dma.done.wait (%p778_p7), %s160_s27, 128  }
  0x47   : > { %628 = vsyncadd (%p778_p7), %s160_s27, 4294967168  ;;  %s855_s26 = sand.u32 1, %s643_s10   ;;  %p375_p12 = scmp.ne.s32.totalorder %s663_s15, 0 }
  0x48   : > { %s858_s29 = scalar_lea.vmem [#allocation5], %s855_s26  ;;  %s861_s24 = scalar_lea.vmem [#allocation6], %s855_s26  ;;  %v685_v0 = vmov (!%p375_p12), inf   ;;  %v686_v1 = vmov (!%p375_p12), -inf  }
  0x49   : > { %191 = sbr.rel (%p375_p12) target bundleno = 80 (0x50), region = 32  ;;  %192 = vst [vmem:[%s858_s29] sm:$0x1] (!%p375_p12), %v685_v0  ;;  %193 = vst [vmem:[%s861_s24] sm:$0x1] (!%p375_p12), %v686_v1 }
  0x50 PF: > { %v494_v2 = vld [vmem:[%s163_s23] sm:$0xff]   ;;  %s377_s15 = sshll.u32 %s667_s16, 4  ;;  %s245_s28 = sshll.u32 %s858_s29, 4  ;;  %s876_s28 = int_to_ptr.vmem [resolvable:$true] %s245_s28 }
  0x51   : > { %v202_v3 = vunpack.i.l.bf16 %v494_v2  ;;  %v203_v4 = vunpack.i.h.bf16 %v494_v2  ;;  %v222_v21 = vld [vmem:[%s858_s29] sm:$0x1]  ;;  %s258_s21 = sshll.u32 %s861_s24, 4  ;;  %s874_s20 = scalar_lea.hbm %s969_s1, %s377_s15  ;;  %s883_s21 = int_to_ptr.vmem [resolvable:$true] %s258_s21 }
  0x52   : > { %v225_v22 = vld [vmem:[%s861_s24] sm:$0x1]  ;;  %s881_s16 = scalar_lea.hbm %s970_s2, %s377_s15  ;;  %s229_s7 = scalar_lea.sflag [#allocation4], %s855_s26 }
  0x53   : > { %v204_v5 = vmin.f32 %v202_v3, %v203_v4  ;;  %v213_v6 = vmax.f32 %v202_v3, %v203_v4  ;;  %s525_s27 = scalar_lea.vmem %s876_s28, 16  ;;  %p979_p2 = scmp.ne.s32.totalorder %s976_s3, 0 }
  0x54   : > { %p526_p7 = scmp.ne.s32.totalorder %s876_s28, %s525_s27  ;;  %s687_s23 = smov [#allocation5]  }
  0x55   : > { %v205_v7 = vrot.slane %v204_v5, 4  ;;  %v214_v8 = vrot.slane %v213_v6, 4  ;;  %s529_s8 = sshll.u32 %s687_s23, 4  ;;  %s530_s8 = int_to_ptr.vmem [resolvable:$false] %s529_s8 }
  0x56   : > { %p527_p4 = pnand %p526_p7, %p979_p2  ;;  %s531_s12 = scalar_lea.vmem %s530_s8, 32 }
  0x57   : > { %v206_v9 = vmin.f32 %v204_v5, %v205_v7  ;;  %v215_v10 = vmax.f32 %v213_v6, %v214_v8  ;;  %p532_p1 = scmp.lt.s32.totalorder %s876_s28, %s530_s8  ;;  %p533_p5 = scmp.lt.s32.totalorder %s531_s12, %s525_s27 }
  0x58   : > { %p528_p0 = pneg %p527_p4 }
  0x59   : > { %v207_v11 = vrot.slane %v206_v9, 2  ;;  %v216_v12 = vrot.slane %v215_v10, 2  ;;  %p534_p8 = por %p533_p5, %p532_p1 }
  0x5b   : > { %v208_v13 = vmin.f32 %v206_v9, %v207_v11  ;;  %v217_v14 = vmax.f32 %v215_v10, %v216_v12  ;;  %p535_p3 = pnand %p534_p8, %p528_p0 }
  0x5d   : > { %v209_v15 = vrot.slane %v208_v13, 1  ;;  %v218_v16 = vrot.slane %v217_v14, 1 }
  0x5f   : > { %v210_v17 = vmin.f32 %v208_v13, %v209_v15  ;;  %v219_v18 = vmax.f32 %v217_v14, %v218_v16 }
  0x61   : > { %v211_v19 = vpack.i.bf16 %v210_v17, %v210_v17  ;;  %v220_v20 = vpack.i.bf16 %v219_v18, %v219_v18 }
  0x63   : > { %v212_v23 = vunpack.c.l.bf16 %v211_v19  ;;  %v221_v24 = vunpack.c.l.bf16 %v220_v20 }
  0x65   : > { %v223_v25 = vmin.f32 %v222_v21, %v212_v23  ;;  %v226_v26 = vmax.f32 %v225_v22, %v221_v24 }
  0x67   : > { %224 = vst [vmem:[%s858_s29] sm:$0x1] %v223_v25  ;;  %227 = vst [vmem:[%s861_s24] sm:$0x1] %v226_v26 }
  0x68   : > { %538 = shalt.err (!%p535_p3)
}
  0x69   : > { %s539_s29 = scalar_lea.hbm %s874_s20, 16  ;;  %s543_s25 = scalar_lea.hbm %s969_s1, 32 }
  0x6a   : > { %p540_p10 = scmp.ne.s32.totalorder %s874_s20, %s539_s29  ;;  %p544_p9 = scmp.lt.u32.totalorder %s874_s20, %s969_s1 }
  0x6b   : > { %p545_p13 = scmp.lt.u32.totalorder %s543_s25, %s539_s29  ;;  %p547_p7 = scmp.lt.u32.totalorder %s539_s29, %s874_s20 }
  0x6c   : > { %p541_p11 = pnand %p540_p10, %p979_p2 }
  0x6d   : > { %p546_p12 = por %p545_p13, %p544_p9 }
  0x6e   : > { %p542_p6 = pneg %p541_p11 }
  0x6f   : > { %p548_p4 = por %p547_p7, %p546_p12 }
  0x71   : > { %p549_p0 = pnand %p548_p4, %p542_p6 }
  0x73   : > { %552 = shalt.err (!%p549_p0)
}
  0x74   : > { %384 = dma.vmem_to_hbm [thread:$0]  (%p979_p2), %s876_s28, 16, %s874_s20, %s229_s7  }
  0x75   : > { %s233_s27 = scalar_lea.sflag [#allocation7], %s855_s26  ;;  %s553_s8 = scalar_lea.vmem %s883_s21, 16 }
  0x76   : > { %p554_p1 = scmp.ne.s32.totalorder %s883_s21, %s553_s8  ;;  %s688_s12 = smov [#allocation6]  }
  0x77   : > { %s557_s29 = sshll.u32 %s688_s12, 4  ;;  %s558_s29 = int_to_ptr.vmem [resolvable:$false] %s557_s29 }
  0x78   : > { %p555_p5 = pnand %p554_p1, %p979_p2  ;;  %s559_s24 = scalar_lea.vmem %s558_s29, 32 }
  0x79   : > { %p560_p3 = scmp.lt.s32.totalorder %s883_s21, %s558_s29  ;;  %p561_p10 = scmp.lt.s32.totalorder %s559_s24, %s553_s8 }
  0x7a   : > { %p556_p8 = pneg %p555_p5 }
  0x7b   : > { %p562_p11 = por %p561_p10, %p560_p3 }
  0x7d   : > { %p563_p6 = pnand %p562_p11, %p556_p8 }
  0x7f   : > { %566 = shalt.err (!%p563_p6)
}
  0x80   : > { %s567_s26 = scalar_lea.hbm %s881_s16, 16  ;;  %s571_s7 = scalar_lea.hbm %s970_s2, 32 }
  0x81   : > { %p568_p9 = scmp.ne.s32.totalorder %s881_s16, %s567_s26  ;;  %p572_p7 = scmp.lt.u32.totalorder %s881_s16, %s970_s2 }
  0x82   : > { %p573_p4 = scmp.lt.u32.totalorder %s571_s7, %s567_s26  ;;  %p575_p1 = scmp.lt.u32.totalorder %s567_s26, %s881_s16 }
  0x83   : > { %p569_p13 = pnand %p568_p9, %p979_p2 }
  0x84   : > { %p574_p0 = por %p573_p4, %p572_p7 }
  0x85   : > { %p570_p12 = pneg %p569_p13 }
  0x86   : > { %p576_p5 = por %p575_p1, %p574_p0 }
  0x88   : > { %p577_p8 = pnand %p576_p5, %p570_p12 }
  0x8a   : > { %580 = shalt.err (!%p577_p8)
}
  0x8b   : > { %385 = dma.vmem_to_hbm [thread:$0]  (%p979_p2), %s883_s21, 16, %s881_s16, %s233_s27  }
  0x8c PF: > { %p400_p3 = scmp.ge.s32.totalorder %s679_s19, 2  ;;  %s270_s30 = sand.u32 1, %s639_s9  }
  0x8d   : > { %p980_p10 = scmp.ne.s32.totalorder %s977_s6, 0  ;;  %s271_s23 = scalar_lea.sflag [#allocation4], %s270_s30 }
  0x8f   : > { %p393_p11 = pnand %p400_p3, %p980_p10 }
  0x91   : > { %630 = dma.done.wait (!%p393_p11), %s271_s23, 16  }
  0x92   : > { %632 = vsyncadd (!%p393_p11), %s271_s23, 4294967280  ;;  %s279_s8 = scalar_lea.sflag [#allocation7], %s270_s30 }
  0x93   : > { %634 = dma.done.wait (!%p393_p11), %s279_s8, 16  }
  0x94   : > { %636 = vsyncadd (!%p393_p11), %s279_s8, 4294967280  ;;  %s22_s19 = sadd.s32 1, %s679_s19   ;;  %s981_s3 = sld [smem:[#allocation11_spill]] }
  0x95   : > { %p19_p6 = scmp.ge.s32.totalorder %s22_s19, 10   ;;  %s982_s9 = smov %s643_s10 }
  0x96   : > { %s983_s10 = smov %s647_s11  ;;  %s984_s11 = smov %s791_s4 }
  0x97   : > { %s985_s12 = smov %s655_s13  ;;  %s986_s13 = smov %s659_s14 }
  0x98   : > { %s987_s14 = smov %s794_s5  ;;  %s988_s15 = smov %s671_s17 }
  0x99   : > { %s989_s16 = smov %s675_s18  ;;  %s990_s17 = smov %s993_s22 }
  0x9a   : > { %s991_s18 = smov %s981_s3  ;;  %21 = sbr.rel (!%p19_p6) target bundleno = 11 (0xb), region = 90 }
  0xa1   :  { %283 = vsyncpa [#allocation3], 1 }
  0xa2   :  { %285 = vsyncpa [#allocation3 + $0x1], 1 }
  0xa3   :  { %286 = vsyncpa [#allocation4], 1 }
  0xa4   :  { %288 = vsyncpa [#allocation4 + $0x1], 1 }
  0xa5   :  { %289 = vsyncpa [#allocation7], 1 }
  0xa6   :  { %291 = vsyncpa [#allocation7 + $0x1], 1 }

</bundles_post_ra>
